<compile_context>
chip_gen: v7x
topology: tpu7x:2x2x1
jax: 0.10.0
libtpu: 0.0.40
codegen_flags: <defaults>
</compile_context>

<pallas_src>
import functools

import numpy as np
import jax
import jax.numpy as jnp
from jax.experimental import pallas as pl
from jax.experimental.pallas import tpu as pltpu

EPS = 1e-5  # nn.BatchNorm2d default eps


def _round_up(x, m):
    return (x + m - 1) // m * m


# ----------------------------- in-kernel conv helper ------------------------------ #

def _conv3x3_matmul(x, w_ref, m_ref, *, img_w, mxu_dtype):
    """3x3 / stride-1 / pad-1 conv of one image as ONE MXU matmul.

    x:      (Cin_p, HW) activations, lane index m = h*W + w (f32 or bf16 values).
    w_ref:  (Cout_p, 9*Cin_p) Ref of tap-major stacked weights (k = t*Cin_p + ci).
    m_ref:  (9, 1, HW) Ref of 0/1 f32 per-tap boundary masks (precomputed on host).
    Returns (Cout_p, HW) f32.

    The 9 lane-rolled + masked tap views are stacked along sublanes (Cin_p is a multiple of
    8, so the concatenate is tile-aligned) and contracted with K = 9*Cin_p in a single
    jnp.dot: accumulation happens inside the MXU instead of 8 VALU adds into a big f32 acc.
    """
    xf = x.astype(jnp.float32)          # rolls/masks in f32; exact for f32/bf16 inputs
    hw = xf.shape[-1]
    taps = []
    for dy in range(3):
        for dx in range(3):
            t = 3 * dy + dx
            shift = (dy - 1) * img_w + (dx - 1)        # input offset for this tap
            if shift == 0:
                taps.append(xf)                        # centre tap: no shift, all valid
            else:
                # xs[:, m] = x[:, m + shift]; wrapped/out-of-image positions zeroed by mask.
                taps.append(pltpu.roll(xf, (-shift) % hw, axis=1) * m_ref[t])
    xstack = jnp.concatenate(taps, axis=0).astype(mxu_dtype)      # (9*Cin_p, HW)
    return jnp.dot(w_ref[...], xstack, preferred_element_type=jnp.float32)


# ----------------------------- Pallas kernels ------------------------------ #

def _conv_stats_kernel(x_ref, w_ref, m_ref, y_ref, ssum_ref, ssq_ref, *, img_w, mxu_dtype):
    # Stage 1: conv1 + per-image (sum, sumsq) partials for global BN1 stats, one pass.
    acc = _conv3x3_matmul(x_ref[0], w_ref, m_ref, img_w=img_w, mxu_dtype=mxu_dtype)
    y_ref[0] = acc.astype(y_ref.dtype)
    ssum_ref[0] = jnp.sum(acc, axis=1, keepdims=True)
    ssq_ref[0] = jnp.sum(acc * acc, axis=1, keepdims=True)


def _bn_relu_conv_stats_kernel(y1_ref, a_ref, b_ref, w_ref, m_ref,
                               y_ref, ssum_ref, ssq_ref, *, img_w, mxu_dtype):
    # Stage 2: fused BN1 (precomputed per-channel scale/shift) + ReLU + conv2 + BN2 partials.
    z = jnp.maximum(y1_ref[0] * a_ref[...] + b_ref[...], 0.0)     # f32 (Cp, HW)
    acc = _conv3x3_matmul(z, w_ref, m_ref, img_w=img_w, mxu_dtype=mxu_dtype)
    y_ref[0] = acc.astype(y_ref.dtype)
    ssum_ref[0] = jnp.sum(acc, axis=1, keepdims=True)
    ssq_ref[0] = jnp.sum(acc * acc, axis=1, keepdims=True)


def _bn_add_kernel(y2_ref, x_ref, a_ref, b_ref, o_ref):
    # Stage 3: fused BN2 + identity-shortcut residual add, written in place over y2 (aliased).
    o_ref[...] = (y2_ref[...] * a_ref[...] + b_ref[...] + x_ref[...]).astype(o_ref.dtype)


# ------------------------------ host-side helpers ----------------------------------- #

def _tap_masks(H, W):
    """0/1 f32 masks (9, 1, H*W): valid input positions per 3x3 tap (compile-time constant)."""
    m = np.arange(H * W)
    hh, ww = m // W, m % W
    masks = []
    for dy in range(3):
        for dx in range(3):
            ok = ((hh + dy - 1 >= 0) & (hh + dy - 1 < H) &
                  (ww + dx - 1 >= 0) & (ww + dx - 1 < W))
            masks.append(ok)
    return jnp.asarray(np.stack(masks).astype(np.float32).reshape(9, 1, H * W))


def _stack_weights(w, cp, dtype):
    """(3,3,Cin,Cout) HWIO -> (Cout_p, 9*Cin_p) tap-major stacked weights (k = t*Cin_p + ci)."""
    _, _, cin, cout = w.shape
    wt = jnp.transpose(w, (3, 0, 1, 2))                            # (Cout, 3, 3, Cin)
    wt = jnp.pad(wt, ((0, cp - cout), (0, 0), (0, 0), (0, cp - cin)))
    return wt.reshape(cp, 9 * cp).astype(dtype)


def _bn_affine(ssum, ssq, gamma, beta, count):
    """Fold global batch stats (biased var, train-mode BN) + affine into per-channel scale/shift."""
    s = jnp.sum(ssum[:, :, 0], axis=0)                 # (Cp,) sum over N*H*W
    q = jnp.sum(ssq[:, :, 0], axis=0)                  # (Cp,) sumsq over N*H*W
    mean = s / count
    # One-pass E[x^2] - mean^2 in f32: fine for (near zero-mean) conv outputs at these sizes;
    # the clamp guards tiny negative values from cancellation.
    var = jnp.maximum(q / count - mean * mean, 0.0)
    scale = gamma * jax.lax.rsqrt(var + EPS)
    shift = beta - mean * scale
    return scale.reshape(-1, 1), shift.reshape(-1, 1)


# ------------------------------ JAX wrapper ----------------------------------- #

@functools.partial(jax.jit, static_argnames=("compute_dtype",))
def resnet_block(x_nchw, w1, g1, b1, w2, g2, b2, *, compute_dtype=jnp.bfloat16):
    """w1, w2: (3, 3, Cin, Cout) HWIO layout.  Requires Cin == Cout (identity shortcut).

    compute_dtype: dtype of the MXU operands and inter-stage intermediates (bf16 fast path
    or f32 exact path).  BN statistics / scale / shift and matmul accumulation are f32.
    """
    N, C, H, W = x_nchw.shape
    HW = H * W
    cout = w1.shape[-1]
    assert cout == C, "identity shortcut requires in_channels == out_channels"
    Cp = _round_up(C, 8)                               # pad channels to the f32 sublane tile
    itemsize = jnp.dtype(compute_dtype).itemsize

    # Activations: flattened NCHW (free reshape) + channel pad + cast for the MXU/DMA path.
    x2d = jnp.pad(x_nchw.reshape(N, C, HW),
                  ((0, 0), (0, Cp - C), (0, 0))).astype(compute_dtype)
    wk1 = _stack_weights(w1, Cp, compute_dtype)        # (Cp, 9*Cp)
    wk2 = _stack_weights(w2, Cp, compute_dtype)
    masks = _tap_masks(H, W)                           # (9, 1, HW) f32 0/1
    g1p = jnp.pad(g1.astype(jnp.float32), (0, Cp - C), constant_values=1.0)
    b1p = jnp.pad(b1.astype(jnp.float32), (0, Cp - C))
    g2p = jnp.pad(g2.astype(jnp.float32), (0, Cp - C), constant_values=1.0)
    b2p = jnp.pad(b2.astype(jnp.float32), (0, Cp - C))

    parallel = pltpu.CompilerParams(dimension_semantics=("parallel",))
    conv_cost = pl.CostEstimate(
        flops=2 * N * HW * 9 * Cp * Cp, transcendentals=0,
        bytes_accessed=(2 * N * Cp * HW * itemsize + 9 * Cp * Cp * itemsize
                        + 9 * HW * 4 + 2 * N * Cp * 4))

    img_spec = pl.BlockSpec((1, Cp, HW), lambda n: (n, 0, 0))
    stat_spec = pl.BlockSpec((1, Cp, 1), lambda n: (n, 0, 0))
    vec_spec = pl.BlockSpec((Cp, 1), lambda n: (0, 0))
    w_spec = pl.BlockSpec((Cp, 9 * Cp), lambda n: (0, 0))
    mask_spec = pl.BlockSpec((9, 1, HW), lambda n: (0, 0, 0))

    img_shape = jax.ShapeDtypeStruct((N, Cp, HW), compute_dtype)
    stat_shape = jax.ShapeDtypeStruct((N, Cp, 1), jnp.float32)

    # ---- stage 1: conv1 (single K=9*Cp matmul) + BN1 statistics in the same pass ----
    y1, s1, q1 = pl.pallas_call(
        functools.partial(_conv_stats_kernel, img_w=W, mxu_dtype=compute_dtype),
        grid=(N,),
        in_specs=[img_spec, w_spec, mask_spec],
        out_specs=[img_spec, stat_spec, stat_spec],
        out_shape=[img_shape, stat_shape, stat_shape],
        compiler_params=parallel,
        cost_estimate=conv_cost,
    )(x2d, wk1, masks)
    a1, sh1 = _bn_affine(s1, q1, g1p, b1p, N * HW)

    # ---- stage 2: BN1 + ReLU fused into conv2 + BN2 statistics (out1 never hits HBM) ----
    y2, s2, q2 = pl.pallas_call(
        functools.partial(_bn_relu_conv_stats_kernel, img_w=W, mxu_dtype=compute_dtype),
        grid=(N,),
        in_specs=[img_spec, vec_spec, vec_spec, w_spec, mask_spec],
        out_specs=[img_spec, stat_spec, stat_spec],
        out_shape=[img_shape, stat_shape, stat_shape],
        compiler_params=parallel,
        cost_estimate=conv_cost,
    )(y1, a1, sh1, wk2, masks)
    a2, sh2 = _bn_affine(s2, q2, g2p, b2p, N * HW)

    # ---- stage 3: BN2 + residual add (memory bound): batch images per grid step and write
    #      the result in place over y2 via input_output_aliases. ----
    nb = max(1, min(N, (2 << 20) // (Cp * HW * itemsize)))
    while N % nb:
        nb -= 1
    blk_spec = pl.BlockSpec((nb, Cp, HW), lambda i: (i, 0, 0))
    vecb_spec = pl.BlockSpec((Cp, 1), lambda i: (0, 0))
    out = pl.pallas_call(
        _bn_add_kernel,
        grid=(N // nb,),
        in_specs=[blk_spec, blk_spec, vecb_spec, vecb_spec],
        out_specs=blk_spec,
        out_shape=jax.ShapeDtypeStruct((N, Cp, HW), compute_dtype),
        input_output_aliases={0: 0},
        compiler_params=parallel,
        cost_estimate=pl.CostEstimate(flops=3 * N * Cp * HW, transcendentals=0,
                                      bytes_accessed=3 * N * Cp * HW * itemsize),
    )(y2, x2d, a2, sh2)

    # Un-pad channels and restore (N, C, H, W); output dtype follows the input.
    return out[:, :C].reshape(N, C, H, W).astype(x_nchw.dtype)


# ----------------------------- pure-JAX reference --------------------------- #

def _ref_block(x_nhwc, w1, g1, b1, w2, g2, b2):
    def conv(x, w):
        return jax.lax.conv_general_dilated(
            x, w, (1, 1), ((1, 1), (1, 1)),
            dimension_numbers=("NHWC", "HWIO", "NHWC"))

    def bn(y, g, b):
        m = jnp.mean(y, axis=(0, 1, 2), keepdims=True)
        v = jnp.mean((y - m) ** 2, axis=(0, 1, 2), keepdims=True)
        return (y - m) * jax.lax.rsqrt(v + EPS) * g + b

    o = jax.nn.relu(bn(conv(x_nhwc, w1), g1, b1))
    o = bn(conv(o, w2), g2, b2)
    return o + x_nhwc


if __name__ == "__main__":
    # in_channels = out_channels = 4, stride = 1, downsample = None
    N, C, H, W = 2, 4, 16, 16
    keys = jax.random.split(jax.random.PRNGKey(0), 7)

    x_nchw = jax.random.normal(keys[0], (N, C, H, W), jnp.float32)
    # Conv2d weights (bias=False), generated directly in HWIO layout.
    w1 = jax.random.normal(keys[1], (3, 3, C, C), jnp.float32) * 0.1
    w2 = jax.random.normal(keys[2], (3, 3, C, C), jnp.float32) * 0.1
    # BatchNorm2d affine params (non-trivial values to exercise the math).
    g1 = jax.random.uniform(keys[3], (C,), jnp.float32, 0.5, 1.5)
    b1 = jax.random.normal(keys[4], (C,), jnp.float32) * 0.1
    g2 = jax.random.uniform(keys[5], (C,), jnp.float32, 0.5, 1.5)
    b2 = jax.random.normal(keys[6], (C,), jnp.float32) * 0.1
    # TODO(synk): running_mean/running_var buffer updates (training-time side effects)
    # are not modeled; only the forward output is reproduced.

    x_nhwc = jnp.transpose(x_nchw, (0, 2, 3, 1))
    ref = jnp.transpose(_ref_block(x_nhwc, w1, g1, b1, w2, g2, b2), (0, 3, 1, 2))

    # Exact path: f32 MXU operands / intermediates -> tight tolerance.
    out_f32 = jax.block_until_ready(
        resnet_block(x_nchw, w1, g1, b1, w2, g2, b2, compute_dtype=jnp.float32))
    assert out_f32.shape == (N, C, H, W)
    err_f32 = float(jnp.max(jnp.abs(out_f32 - ref)))
    assert err_f32 < 1e-3, err_f32

    # Fast path: bf16 MXU operands + bf16 inter-stage intermediates (full MXU rate, ~half the
    # activation HBM traffic).  Tolerance is EXPLICITLY relaxed per the perf review: roughly
    # bf16 eps (2^-8) times the output dynamic range (|out|max ~ 6) across 2 convs + 2 BNs.
    out_bf16 = jax.block_until_ready(
        resnet_block(x_nchw, w1, g1, b1, w2, g2, b2, compute_dtype=jnp.bfloat16))
    err_bf16 = float(jnp.max(jnp.abs(out_bf16.astype(jnp.float32) - ref)))
    assert err_bf16 < 1.5e-1, err_bf16

    print("KERNEL_OK")
</pallas_src>

<mosaic_0001>
module attributes {stable_mosaic.version = 11 : i64} {
  func.func @_conv_stats_kernel(%arg0: i32, %arg1: memref<1x8x256xf32, #tpu.memory_space<vmem>>, %arg2: memref<8x72xf32, #tpu.memory_space<vmem>>, %arg3: memref<9x1x256xf32, #tpu.memory_space<vmem>>, %arg4: memref<1x8x256xf32, #tpu.memory_space<vmem>>, %arg5: memref<1x8x1xf32, #tpu.memory_space<vmem>>, %arg6: memref<1x8x1xf32, #tpu.memory_space<vmem>>) attributes {dimension_semantics = [#tpu.dimension_semantics<parallel>], iteration_bounds = array<i64: 2>, scalar_prefetch = 0 : i64, scratch_operands = 0 : i64, tpu.core_type = #tpu.core_type<tc>, window_params = [{transform_indices = @transform_0, window_bounds = array<i64: 1, 8, 256>}, {pipeline_mode = #tpu.pipeline_mode<synchronous>, transform_indices = @transform_1, window_bounds = array<i64: 8, 72>}, {pipeline_mode = #tpu.pipeline_mode<synchronous>, transform_indices = @transform_2, window_bounds = array<i64: 9, 1, 256>}, {transform_indices = @transform_3, window_bounds = array<i64: 1, 8, 256>}, {transform_indices = @transform_4, window_bounds = array<i64: 1, 8, 1>}, {transform_indices = @transform_5, window_bounds = array<i64: 1, 8, 1>}]} {
    %c0 = arith.constant 0 : index
    %c0_0 = arith.constant 0 : index
    %c0_1 = arith.constant 0 : index
    %0 = vector.load %arg1[%c0, %c0_0, %c0_1] : memref<1x8x256xf32, #tpu.memory_space<vmem>>, vector<1x8x256xf32>
    %1 = vector.shape_cast %0 : vector<1x8x256xf32> to vector<8x256xf32>
    %c17_i32 = arith.constant 17 : i32
    %2 = tpu.dynamic_rotate %1 by %c17_i32 dim 1 : vector<8x256xf32>, i32 -> vector<8x256xf32>
    %c0_2 = arith.constant 0 : index
    %c0_3 = arith.constant 0 : index
    %c0_4 = arith.constant 0 : index
    %3 = vector.load %arg3[%c0_2, %c0_3, %c0_4] : memref<9x1x256xf32, #tpu.memory_space<vmem>>, vector<1x1x256xf32>
    %4 = vector.shape_cast %3 : vector<1x1x256xf32> to vector<1x256xf32>
    %5 = vector.broadcast %4 : vector<1x256xf32> to vector<8x256xf32>
    %6 = arith.mulf %2, %5 : vector<8x256xf32>
    %c16_i32 = arith.constant 16 : i32
    %7 = tpu.dynamic_rotate %1 by %c16_i32 dim 1 : vector<8x256xf32>, i32 -> vector<8x256xf32>
    %c1 = arith.constant 1 : index
    %c0_5 = arith.constant 0 : index
    %c0_6 = arith.constant 0 : index
    %8 = vector.load %arg3[%c1, %c0_5, %c0_6] : memref<9x1x256xf32, #tpu.memory_space<vmem>>, vector<1x1x256xf32>
    %9 = vector.shape_cast %8 : vector<1x1x256xf32> to vector<1x256xf32>
    %10 = vector.broadcast %9 : vector<1x256xf32> to vector<8x256xf32>
    %11 = arith.mulf %7, %10 : vector<8x256xf32>
    %c15_i32 = arith.constant 15 : i32
    %12 = tpu.dynamic_rotate %1 by %c15_i32 dim 1 : vector<8x256xf32>, i32 -> vector<8x256xf32>
    %c2 = arith.constant 2 : index
    %c0_7 = arith.constant 0 : index
    %c0_8 = arith.constant 0 : index
    %13 = vector.load %arg3[%c2, %c0_7, %c0_8] : memref<9x1x256xf32, #tpu.memory_space<vmem>>, vector<1x1x256xf32>
    %14 = vector.shape_cast %13 : vector<1x1x256xf32> to vector<1x256xf32>
    %15 = vector.broadcast %14 : vector<1x256xf32> to vector<8x256xf32>
    %16 = arith.mulf %12, %15 : vector<8x256xf32>
    %c1_i32 = arith.constant 1 : i32
    %17 = tpu.dynamic_rotate %1 by %c1_i32 dim 1 : vector<8x256xf32>, i32 -> vector<8x256xf32>
    %c3 = arith.constant 3 : index
    %c0_9 = arith.constant 0 : index
    %c0_10 = arith.constant 0 : index
    %18 = vector.load %arg3[%c3, %c0_9, %c0_10] : memref<9x1x256xf32, #tpu.memory_space<vmem>>, vector<1x1x256xf32>
    %19 = vector.shape_cast %18 : vector<1x1x256xf32> to vector<1x256xf32>
    %20 = vector.broadcast %19 : vector<1x256xf32> to vector<8x256xf32>
    %21 = arith.mulf %17, %20 : vector<8x256xf32>
    %c255_i32 = arith.constant 255 : i32
    %22 = tpu.dynamic_rotate %1 by %c255_i32 dim 1 : vector<8x256xf32>, i32 -> vector<8x256xf32>
    %c5 = arith.constant 5 : index
    %c0_11 = arith.constant 0 : index
    %c0_12 = arith.constant 0 : index
    %23 = vector.load %arg3[%c5, %c0_11, %c0_12] : memref<9x1x256xf32, #tpu.memory_space<vmem>>, vector<1x1x256xf32>
    %24 = vector.shape_cast %23 : vector<1x1x256xf32> to vector<1x256xf32>
    %25 = vector.broadcast %24 : vector<1x256xf32> to vector<8x256xf32>
    %26 = arith.mulf %22, %25 : vector<8x256xf32>
    %c241_i32 = arith.constant 241 : i32
    %27 = tpu.dynamic_rotate %1 by %c241_i32 dim 1 : vector<8x256xf32>, i32 -> vector<8x256xf32>
    %c6 = arith.constant 6 : index
    %c0_13 = arith.constant 0 : index
    %c0_14 = arith.constant 0 : index
    %28 = vector.load %arg3[%c6, %c0_13, %c0_14] : memref<9x1x256xf32, #tpu.memory_space<vmem>>, vector<1x1x256xf32>
    %29 = vector.shape_cast %28 : vector<1x1x256xf32> to vector<1x256xf32>
    %30 = vector.broadcast %29 : vector<1x256xf32> to vector<8x256xf32>
    %31 = arith.mulf %27, %30 : vector<8x256xf32>
    %c240_i32 = arith.constant 240 : i32
    %32 = tpu.dynamic_rotate %1 by %c240_i32 dim 1 : vector<8x256xf32>, i32 -> vector<8x256xf32>
    %c7 = arith.constant 7 : index
    %c0_15 = arith.constant 0 : index
    %c0_16 = arith.constant 0 : index
    %33 = vector.load %arg3[%c7, %c0_15, %c0_16] : memref<9x1x256xf32, #tpu.memory_space<vmem>>, vector<1x1x256xf32>
    %34 = vector.shape_cast %33 : vector<1x1x256xf32> to vector<1x256xf32>
    %35 = vector.broadcast %34 : vector<1x256xf32> to vector<8x256xf32>
    %36 = arith.mulf %32, %35 : vector<8x256xf32>
    %c239_i32 = arith.constant 239 : i32
    %37 = tpu.dynamic_rotate %1 by %c239_i32 dim 1 : vector<8x256xf32>, i32 -> vector<8x256xf32>
    %c8 = arith.constant 8 : index
    %c0_17 = arith.constant 0 : index
    %c0_18 = arith.constant 0 : index
    %38 = vector.load %arg3[%c8, %c0_17, %c0_18] : memref<9x1x256xf32, #tpu.memory_space<vmem>>, vector<1x1x256xf32>
    %39 = vector.shape_cast %38 : vector<1x1x256xf32> to vector<1x256xf32>
    %40 = vector.broadcast %39 : vector<1x256xf32> to vector<8x256xf32>
    %41 = arith.mulf %37, %40 : vector<8x256xf32>
    %42 = tpu.concatenate %6, %11, %16, %21, %1, %26, %31, %36, %41 in 0 : vector<8x256xf32>, vector<8x256xf32>, vector<8x256xf32>, vector<8x256xf32>, vector<8x256xf32>, vector<8x256xf32>, vector<8x256xf32>, vector<8x256xf32>, vector<8x256xf32> -> vector<72x256xf32>
    %c0_19 = arith.constant 0 : index
    %c0_20 = arith.constant 0 : index
    %43 = vector.load %arg2[%c0_19, %c0_20] : memref<8x72xf32, #tpu.memory_space<vmem>>, vector<8x72xf32>
    %cst = arith.constant dense<0.000000e+00> : vector<8x256xf32>
    %44 = tpu.matmul %43, %42, %cst {dimension_numbers = #tpu.dot_dimension_numbers<[1], [0], [0], [1], [0, 0, 1, 1], [], []>} : vector<8x72xf32>, vector<72x256xf32>, vector<8x256xf32> -> vector<8x256xf32>
    %c0_21 = arith.constant 0 : index
    %c0_22 = arith.constant 0 : index
    %c0_23 = arith.constant 0 : index
    %45 = vector.load %arg4[%c0_21, %c0_22, %c0_23] : memref<1x8x256xf32, #tpu.memory_space<vmem>>, vector<1x8x256xf32>
    %46 = vector.shape_cast %45 : vector<1x8x256xf32> to vector<8x256xf32>
    %47 = vector.shape_cast %44 : vector<8x256xf32> to vector<1x8x256xf32>
    tpu.vector_store %arg4[%c0_21, %c0_22, %c0_23], %47 {strides = array<i32>} : memref<1x8x256xf32, #tpu.memory_space<vmem>>, vector<1x8x256xf32>,
    %cst_24 = arith.constant dense<0.000000e+00> : vector<8xf32>
    %48 = vector.multi_reduction <add>, %44, %cst_24 [1] : vector<8x256xf32> to vector<8xf32>
    %49 = vector.shape_cast %48 : vector<8xf32> to vector<8x1xf32>
    %c0_25 = arith.constant 0 : index
    %c0_26 = arith.constant 0 : index
    %c0_27 = arith.constant 0 : index
    %50 = vector.load %arg5[%c0_25, %c0_26, %c0_27] : memref<1x8x1xf32, #tpu.memory_space<vmem>>, vector<1x8x1xf32>
    %51 = vector.shape_cast %50 : vector<1x8x1xf32> to vector<8x1xf32>
    %52 = vector.shape_cast %49 : vector<8x1xf32> to vector<1x8x1xf32>
    tpu.vector_store %arg5[%c0_25, %c0_26, %c0_27], %52 {strides = array<i32>} : memref<1x8x1xf32, #tpu.memory_space<vmem>>, vector<1x8x1xf32>,
    %53 = arith.mulf %44, %44 : vector<8x256xf32>
    %cst_28 = arith.constant dense<0.000000e+00> : vector<8xf32>
    %54 = vector.multi_reduction <add>, %53, %cst_28 [1] : vector<8x256xf32> to vector<8xf32>
    %55 = vector.shape_cast %54 : vector<8xf32> to vector<8x1xf32>
    %c0_29 = arith.constant 0 : index
    %c0_30 = arith.constant 0 : index
    %c0_31 = arith.constant 0 : index
    %56 = vector.load %arg6[%c0_29, %c0_30, %c0_31] : memref<1x8x1xf32, #tpu.memory_space<vmem>>, vector<1x8x1xf32>
    %57 = vector.shape_cast %56 : vector<1x8x1xf32> to vector<8x1xf32>
    %58 = vector.shape_cast %55 : vector<8x1xf32> to vector<1x8x1xf32>
    tpu.vector_store %arg6[%c0_29, %c0_30, %c0_31], %58 {strides = array<i32>} : memref<1x8x1xf32, #tpu.memory_space<vmem>>, vector<1x8x1xf32>,
    return
  }
  func.func @transform_0(%arg0: i32) -> (i32, i32, i32) {
    %c0_i32 = arith.constant 0 : i32
    %c0_i32_0 = arith.constant 0 : i32
    %c0_i32_1 = arith.constant 0 : i32
    return %arg0, %c0_i32, %c0_i32_0 : i32, i32, i32
  }
  func.func @transform_1(%arg0: i32) -> (i32, i32) {
    %c0_i32 = arith.constant 0 : i32
    %c0_i32_0 = arith.constant 0 : i32
    %c0_i32_1 = arith.constant 0 : i32
    return %c0_i32, %c0_i32_0 : i32, i32
  }
  func.func @transform_2(%arg0: i32) -> (i32, i32, i32) {
    %c0_i32 = arith.constant 0 : i32
    %c0_i32_0 = arith.constant 0 : i32
    %c0_i32_1 = arith.constant 0 : i32
    %c0_i32_2 = arith.constant 0 : i32
    return %c0_i32, %c0_i32_0, %c0_i32_1 : i32, i32, i32
  }
  func.func @transform_3(%arg0: i32) -> (i32, i32, i32) {
    %c0_i32 = arith.constant 0 : i32
    %c0_i32_0 = arith.constant 0 : i32
    %c0_i32_1 = arith.constant 0 : i32
    return %arg0, %c0_i32, %c0_i32_0 : i32, i32, i32
  }
  func.func @transform_4(%arg0: i32) -> (i32, i32, i32) {
    %c0_i32 = arith.constant 0 : i32
    %c0_i32_0 = arith.constant 0 : i32
    %c0_i32_1 = arith.constant 0 : i32
    return %arg0, %c0_i32, %c0_i32_0 : i32, i32, i32
  }
  func.func @transform_5(%arg0: i32) -> (i32, i32, i32) {
    %c0_i32 = arith.constant 0 : i32
    %c0_i32_0 = arith.constant 0 : i32
    %c0_i32_1 = arith.constant 0 : i32
    return %arg0, %c0_i32, %c0_i32_0 : i32, i32, i32
  }
}

module attributes {stable_mosaic.version = 11 : i64} {
  func.func @_bn_add_kernel(%arg0: i32, %arg1: memref<2x8x256xf32, #tpu.memory_space<vmem>>, %arg2: memref<2x8x256xf32, #tpu.memory_space<vmem>>, %arg3: memref<8x1xf32, #tpu.memory_space<vmem>>, %arg4: memref<8x1xf32, #tpu.memory_space<vmem>>, %arg5: memref<2x8x256xf32, #tpu.memory_space<vmem>>) attributes {dimension_semantics = [#tpu.dimension_semantics<parallel>], iteration_bounds = array<i64: 1>, scalar_prefetch = 0 : i64, scratch_operands = 0 : i64, tpu.core_type = #tpu.core_type<tc>, window_params = [{transform_indices = @transform_0, window_bounds = array<i64: 2, 8, 256>}, {transform_indices = @transform_1, window_bounds = array<i64: 2, 8, 256>}, {pipeline_mode = #tpu.pipeline_mode<synchronous>, transform_indices = @transform_2, window_bounds = array<i64: 8, 1>}, {pipeline_mode = #tpu.pipeline_mode<synchronous>, transform_indices = @transform_3, window_bounds = array<i64: 8, 1>}, {transform_indices = @transform_4, window_bounds = array<i64: 2, 8, 256>}]} {
    %c0 = arith.constant 0 : index
    %c0_0 = arith.constant 0 : index
    %c0_1 = arith.constant 0 : index
    %0 = vector.load %arg1[%c0, %c0_0, %c0_1] : memref<2x8x256xf32, #tpu.memory_space<vmem>>, vector<2x8x256xf32>
    %c0_2 = arith.constant 0 : index
    %c0_3 = arith.constant 0 : index
    %1 = vector.load %arg3[%c0_2, %c0_3] : memref<8x1xf32, #tpu.memory_space<vmem>>, vector<8x1xf32>
    %2 = vector.shape_cast %1 : vector<8x1xf32> to vector<1x8x1xf32>
    %3 = vector.broadcast %2 : vector<1x8x1xf32> to vector<2x8x256xf32>
    %4 = arith.mulf %0, %3 : vector<2x8x256xf32>
    %c0_4 = arith.constant 0 : index
    %c0_5 = arith.constant 0 : index
    %5 = vector.load %arg4[%c0_4, %c0_5] : memref<8x1xf32, #tpu.memory_space<vmem>>, vector<8x1xf32>
    %6 = vector.shape_cast %5 : vector<8x1xf32> to vector<1x8x1xf32>
    %7 = vector.broadcast %6 : vector<1x8x1xf32> to vector<2x8x256xf32>
    %8 = arith.addf %4, %7 : vector<2x8x256xf32>
    %c0_6 = arith.constant 0 : index
    %c0_7 = arith.constant 0 : index
    %c0_8 = arith.constant 0 : index
    %9 = vector.load %arg2[%c0_6, %c0_7, %c0_8] : memref<2x8x256xf32, #tpu.memory_space<vmem>>, vector<2x8x256xf32>
    %10 = arith.addf %8, %9 : vector<2x8x256xf32>
    %c0_9 = arith.constant 0 : index
    %c0_10 = arith.constant 0 : index
    %c0_11 = arith.constant 0 : index
    %11 = vector.load %arg5[%c0_9, %c0_10, %c0_11] : memref<2x8x256xf32, #tpu.memory_space<vmem>>, vector<2x8x256xf32>
    tpu.vector_store %arg5[%c0_9, %c0_10, %c0_11], %10 {strides = array<i32>} : memref<2x8x256xf32, #tpu.memory_space<vmem>>, vector<2x8x256xf32>,
    return
  }
  func.func @transform_0(%arg0: i32) -> (i32, i32, i32) {
    %c0_i32 = arith.constant 0 : i32
    %c0_i32_0 = arith.constant 0 : i32
    %c0_i32_1 = arith.constant 0 : i32
    return %arg0, %c0_i32, %c0_i32_0 : i32, i32, i32
  }
  func.func @transform_1(%arg0: i32) -> (i32, i32, i32) {
    %c0_i32 = arith.constant 0 : i32
    %c0_i32_0 = arith.constant 0 : i32
    %c0_i32_1 = arith.constant 0 : i32
    return %arg0, %c0_i32, %c0_i32_0 : i32, i32, i32
  }
  func.func @transform_2(%arg0: i32) -> (i32, i32) {
    %c0_i32 = arith.constant 0 : i32
    %c0_i32_0 = arith.constant 0 : i32
    %c0_i32_1 = arith.constant 0 : i32
    return %c0_i32, %c0_i32_0 : i32, i32
  }
  func.func @transform_3(%arg0: i32) -> (i32, i32) {
    %c0_i32 = arith.constant 0 : i32
    %c0_i32_0 = arith.constant 0 : i32
    %c0_i32_1 = arith.constant 0 : i32
    return %c0_i32, %c0_i32_0 : i32, i32
  }
  func.func @transform_4(%arg0: i32) -> (i32, i32, i32) {
    %c0_i32 = arith.constant 0 : i32
    %c0_i32_0 = arith.constant 0 : i32
    %c0_i32_1 = arith.constant 0 : i32
    return %arg0, %c0_i32, %c0_i32_0 : i32, i32, i32
  }
}

module attributes {stable_mosaic.version = 11 : i64} {
  func.func @_bn_relu_conv_stats_kernel(%arg0: i32, %arg1: memref<1x8x256xf32, #tpu.memory_space<vmem>>, %arg2: memref<8x1xf32, #tpu.memory_space<vmem>>, %arg3: memref<8x1xf32, #tpu.memory_space<vmem>>, %arg4: memref<8x72xf32, #tpu.memory_space<vmem>>, %arg5: memref<9x1x256xf32, #tpu.memory_space<vmem>>, %arg6: memref<1x8x256xf32, #tpu.memory_space<vmem>>, %arg7: memref<1x8x1xf32, #tpu.memory_space<vmem>>, %arg8: memref<1x8x1xf32, #tpu.memory_space<vmem>>) attributes {dimension_semantics = [#tpu.dimension_semantics<parallel>], iteration_bounds = array<i64: 2>, scalar_prefetch = 0 : i64, scratch_operands = 0 : i64, tpu.core_type = #tpu.core_type<tc>, window_params = [{transform_indices = @transform_0, window_bounds = array<i64: 1, 8, 256>}, {pipeline_mode = #tpu.pipeline_mode<synchronous>, transform_indices = @transform_1, window_bounds = array<i64: 8, 1>}, {pipeline_mode = #tpu.pipeline_mode<synchronous>, transform_indices = @transform_2, window_bounds = array<i64: 8, 1>}, {pipeline_mode = #tpu.pipeline_mode<synchronous>, transform_indices = @transform_3, window_bounds = array<i64: 8, 72>}, {pipeline_mode = #tpu.pipeline_mode<synchronous>, transform_indices = @transform_4, window_bounds = array<i64: 9, 1, 256>}, {transform_indices = @transform_5, window_bounds = array<i64: 1, 8, 256>}, {transform_indices = @transform_6, window_bounds = array<i64: 1, 8, 1>}, {transform_indices = @transform_7, window_bounds = array<i64: 1, 8, 1>}]} {
    %c0 = arith.constant 0 : index
    %c0_0 = arith.constant 0 : index
    %c0_1 = arith.constant 0 : index
    %0 = vector.load %arg1[%c0, %c0_0, %c0_1] : memref<1x8x256xf32, #tpu.memory_space<vmem>>, vector<1x8x256xf32>
    %1 = vector.shape_cast %0 : vector<1x8x256xf32> to vector<8x256xf32>
    %c0_2 = arith.constant 0 : index
    %c0_3 = arith.constant 0 : index
    %2 = vector.load %arg2[%c0_2, %c0_3] : memref<8x1xf32, #tpu.memory_space<vmem>>, vector<8x1xf32>
    %3 = vector.broadcast %2 : vector<8x1xf32> to vector<8x256xf32>
    %4 = arith.mulf %1, %3 : vector<8x256xf32>
    %c0_4 = arith.constant 0 : index
    %c0_5 = arith.constant 0 : index
    %5 = vector.load %arg3[%c0_4, %c0_5] : memref<8x1xf32, #tpu.memory_space<vmem>>, vector<8x1xf32>
    %6 = vector.broadcast %5 : vector<8x1xf32> to vector<8x256xf32>
    %7 = arith.addf %4, %6 : vector<8x256xf32>
    %cst = arith.constant 0.000000e+00 : f32
    %8 = vector.broadcast %cst : f32 to vector<8x256xf32>
    %9 = arith.maximumf %7, %8 : vector<8x256xf32>
    %c17_i32 = arith.constant 17 : i32
    %10 = tpu.dynamic_rotate %9 by %c17_i32 dim 1 : vector<8x256xf32>, i32 -> vector<8x256xf32>
    %c0_6 = arith.constant 0 : index
    %c0_7 = arith.constant 0 : index
    %c0_8 = arith.constant 0 : index
    %11 = vector.load %arg5[%c0_6, %c0_7, %c0_8] : memref<9x1x256xf32, #tpu.memory_space<vmem>>, vector<1x1x256xf32>
    %12 = vector.shape_cast %11 : vector<1x1x256xf32> to vector<1x256xf32>
    %13 = vector.broadcast %12 : vector<1x256xf32> to vector<8x256xf32>
    %14 = arith.mulf %10, %13 : vector<8x256xf32>
    %c16_i32 = arith.constant 16 : i32
    %15 = tpu.dynamic_rotate %9 by %c16_i32 dim 1 : vector<8x256xf32>, i32 -> vector<8x256xf32>
    %c1 = arith.constant 1 : index
    %c0_9 = arith.constant 0 : index
    %c0_10 = arith.constant 0 : index
    %16 = vector.load %arg5[%c1, %c0_9, %c0_10] : memref<9x1x256xf32, #tpu.memory_space<vmem>>, vector<1x1x256xf32>
    %17 = vector.shape_cast %16 : vector<1x1x256xf32> to vector<1x256xf32>
    %18 = vector.broadcast %17 : vector<1x256xf32> to vector<8x256xf32>
    %19 = arith.mulf %15, %18 : vector<8x256xf32>
    %c15_i32 = arith.constant 15 : i32
    %20 = tpu.dynamic_rotate %9 by %c15_i32 dim 1 : vector<8x256xf32>, i32 -> vector<8x256xf32>
    %c2 = arith.constant 2 : index
    %c0_11 = arith.constant 0 : index
    %c0_12 = arith.constant 0 : index
    %21 = vector.load %arg5[%c2, %c0_11, %c0_12] : memref<9x1x256xf32, #tpu.memory_space<vmem>>, vector<1x1x256xf32>
    %22 = vector.shape_cast %21 : vector<1x1x256xf32> to vector<1x256xf32>
    %23 = vector.broadcast %22 : vector<1x256xf32> to vector<8x256xf32>
    %24 = arith.mulf %20, %23 : vector<8x256xf32>
    %c1_i32 = arith.constant 1 : i32
    %25 = tpu.dynamic_rotate %9 by %c1_i32 dim 1 : vector<8x256xf32>, i32 -> vector<8x256xf32>
    %c3 = arith.constant 3 : index
    %c0_13 = arith.constant 0 : index
    %c0_14 = arith.constant 0 : index
    %26 = vector.load %arg5[%c3, %c0_13, %c0_14] : memref<9x1x256xf32, #tpu.memory_space<vmem>>, vector<1x1x256xf32>
    %27 = vector.shape_cast %26 : vector<1x1x256xf32> to vector<1x256xf32>
    %28 = vector.broadcast %27 : vector<1x256xf32> to vector<8x256xf32>
    %29 = arith.mulf %25, %28 : vector<8x256xf32>
    %c255_i32 = arith.constant 255 : i32
    %30 = tpu.dynamic_rotate %9 by %c255_i32 dim 1 : vector<8x256xf32>, i32 -> vector<8x256xf32>
    %c5 = arith.constant 5 : index
    %c0_15 = arith.constant 0 : index
    %c0_16 = arith.constant 0 : index
    %31 = vector.load %arg5[%c5, %c0_15, %c0_16] : memref<9x1x256xf32, #tpu.memory_space<vmem>>, vector<1x1x256xf32>
    %32 = vector.shape_cast %31 : vector<1x1x256xf32> to vector<1x256xf32>
    %33 = vector.broadcast %32 : vector<1x256xf32> to vector<8x256xf32>
    %34 = arith.mulf %30, %33 : vector<8x256xf32>
    %c241_i32 = arith.constant 241 : i32
    %35 = tpu.dynamic_rotate %9 by %c241_i32 dim 1 : vector<8x256xf32>, i32 -> vector<8x256xf32>
    %c6 = arith.constant 6 : index
    %c0_17 = arith.constant 0 : index
    %c0_18 = arith.constant 0 : index
    %36 = vector.load %arg5[%c6, %c0_17, %c0_18] : memref<9x1x256xf32, #tpu.memory_space<vmem>>, vector<1x1x256xf32>
    %37 = vector.shape_cast %36 : vector<1x1x256xf32> to vector<1x256xf32>
    %38 = vector.broadcast %37 : vector<1x256xf32> to vector<8x256xf32>
    %39 = arith.mulf %35, %38 : vector<8x256xf32>
    %c240_i32 = arith.constant 240 : i32
    %40 = tpu.dynamic_rotate %9 by %c240_i32 dim 1 : vector<8x256xf32>, i32 -> vector<8x256xf32>
    %c7 = arith.constant 7 : index
    %c0_19 = arith.constant 0 : index
    %c0_20 = arith.constant 0 : index
    %41 = vector.load %arg5[%c7, %c0_19, %c0_20] : memref<9x1x256xf32, #tpu.memory_space<vmem>>, vector<1x1x256xf32>
    %42 = vector.shape_cast %41 : vector<1x1x256xf32> to vector<1x256xf32>
    %43 = vector.broadcast %42 : vector<1x256xf32> to vector<8x256xf32>
    %44 = arith.mulf %40, %43 : vector<8x256xf32>
    %c239_i32 = arith.constant 239 : i32
    %45 = tpu.dynamic_rotate %9 by %c239_i32 dim 1 : vector<8x256xf32>, i32 -> vector<8x256xf32>
    %c8 = arith.constant 8 : index
    %c0_21 = arith.constant 0 : index
    %c0_22 = arith.constant 0 : index
    %46 = vector.load %arg5[%c8, %c0_21, %c0_22] : memref<9x1x256xf32, #tpu.memory_space<vmem>>, vector<1x1x256xf32>
    %47 = vector.shape_cast %46 : vector<1x1x256xf32> to vector<1x256xf32>
    %48 = vector.broadcast %47 : vector<1x256xf32> to vector<8x256xf32>
    %49 = arith.mulf %45, %48 : vector<8x256xf32>
    %50 = tpu.concatenate %14, %19, %24, %29, %9, %34, %39, %44, %49 in 0 : vector<8x256xf32>, vector<8x256xf32>, vector<8x256xf32>, vector<8x256xf32>, vector<8x256xf32>, vector<8x256xf32>, vector<8x256xf32>, vector<8x256xf32>, vector<8x256xf32> -> vector<72x256xf32>
    %c0_23 = arith.constant 0 : index
    %c0_24 = arith.constant 0 : index
    %51 = vector.load %arg4[%c0_23, %c0_24] : memref<8x72xf32, #tpu.memory_space<vmem>>, vector<8x72xf32>
    %cst_25 = arith.constant dense<0.000000e+00> : vector<8x256xf32>
    %52 = tpu.matmul %51, %50, %cst_25 {dimension_numbers = #tpu.dot_dimension_numbers<[1], [0], [0], [1], [0, 0, 1, 1], [], []>} : vector<8x72xf32>, vector<72x256xf32>, vector<8x256xf32> -> vector<8x256xf32>
    %c0_26 = arith.constant 0 : index
    %c0_27 = arith.constant 0 : index
    %c0_28 = arith.constant 0 : index
    %53 = vector.load %arg6[%c0_26, %c0_27, %c0_28] : memref<1x8x256xf32, #tpu.memory_space<vmem>>, vector<1x8x256xf32>
    %54 = vector.shape_cast %53 : vector<1x8x256xf32> to vector<8x256xf32>
    %55 = vector.shape_cast %52 : vector<8x256xf32> to vector<1x8x256xf32>
    tpu.vector_store %arg6[%c0_26, %c0_27, %c0_28], %55 {strides = array<i32>} : memref<1x8x256xf32, #tpu.memory_space<vmem>>, vector<1x8x256xf32>,
    %cst_29 = arith.constant dense<0.000000e+00> : vector<8xf32>
    %56 = vector.multi_reduction <add>, %52, %cst_29 [1] : vector<8x256xf32> to vector<8xf32>
    %57 = vector.shape_cast %56 : vector<8xf32> to vector<8x1xf32>
    %c0_30 = arith.constant 0 : index
    %c0_31 = arith.constant 0 : index
    %c0_32 = arith.constant 0 : index
    %58 = vector.load %arg7[%c0_30, %c0_31, %c0_32] : memref<1x8x1xf32, #tpu.memory_space<vmem>>, vector<1x8x1xf32>
    %59 = vector.shape_cast %58 : vector<1x8x1xf32> to vector<8x1xf32>
    %60 = vector.shape_cast %57 : vector<8x1xf32> to vector<1x8x1xf32>
    tpu.vector_store %arg7[%c0_30, %c0_31, %c0_32], %60 {strides = array<i32>} : memref<1x8x1xf32, #tpu.memory_space<vmem>>, vector<1x8x1xf32>,
    %61 = arith.mulf %52, %52 : vector<8x256xf32>
    %cst_33 = arith.constant dense<0.000000e+00> : vector<8xf32>
    %62 = vector.multi_reduction <add>, %61, %cst_33 [1] : vector<8x256xf32> to vector<8xf32>
    %63 = vector.shape_cast %62 : vector<8xf32> to vector<8x1xf32>
    %c0_34 = arith.constant 0 : index
    %c0_35 = arith.constant 0 : index
    %c0_36 = arith.constant 0 : index
    %64 = vector.load %arg8[%c0_34, %c0_35, %c0_36] : memref<1x8x1xf32, #tpu.memory_space<vmem>>, vector<1x8x1xf32>
    %65 = vector.shape_cast %64 : vector<1x8x1xf32> to vector<8x1xf32>
    %66 = vector.shape_cast %63 : vector<8x1xf32> to vector<1x8x1xf32>
    tpu.vector_store %arg8[%c0_34, %c0_35, %c0_36], %66 {strides = array<i32>} : memref<1x8x1xf32, #tpu.memory_space<vmem>>, vector<1x8x1xf32>,
    return
  }
  func.func @transform_0(%arg0: i32) -> (i32, i32, i32) {
    %c0_i32 = arith.constant 0 : i32
    %c0_i32_0 = arith.constant 0 : i32
    %c0_i32_1 = arith.constant 0 : i32
    return %arg0, %c0_i32, %c0_i32_0 : i32, i32, i32
  }
  func.func @transform_1(%arg0: i32) -> (i32, i32) {
    %c0_i32 = arith.constant 0 : i32
    %c0_i32_0 = arith.constant 0 : i32
    %c0_i32_1 = arith.constant 0 : i32
    return %c0_i32, %c0_i32_0 : i32, i32
  }
  func.func @transform_2(%arg0: i32) -> (i32, i32) {
    %c0_i32 = arith.constant 0 : i32
    %c0_i32_0 = arith.constant 0 : i32
    %c0_i32_1 = arith.constant 0 : i32
    return %c0_i32, %c0_i32_0 : i32, i32
  }
  func.func @transform_3(%arg0: i32) -> (i32, i32) {
    %c0_i32 = arith.constant 0 : i32
    %c0_i32_0 = arith.constant 0 : i32
    %c0_i32_1 = arith.constant 0 : i32
    return %c0_i32, %c0_i32_0 : i32, i32
  }
  func.func @transform_4(%arg0: i32) -> (i32, i32, i32) {
    %c0_i32 = arith.constant 0 : i32
    %c0_i32_0 = arith.constant 0 : i32
    %c0_i32_1 = arith.constant 0 : i32
    %c0_i32_2 = arith.constant 0 : i32
    return %c0_i32, %c0_i32_0, %c0_i32_1 : i32, i32, i32
  }
  func.func @transform_5(%arg0: i32) -> (i32, i32, i32) {
    %c0_i32 = arith.constant 0 : i32
    %c0_i32_0 = arith.constant 0 : i32
    %c0_i32_1 = arith.constant 0 : i32
    return %arg0, %c0_i32, %c0_i32_0 : i32, i32, i32
  }
  func.func @transform_6(%arg0: i32) -> (i32, i32, i32) {
    %c0_i32 = arith.constant 0 : i32
    %c0_i32_0 = arith.constant 0 : i32
    %c0_i32_1 = arith.constant 0 : i32
    return %arg0, %c0_i32, %c0_i32_0 : i32, i32, i32
  }
  func.func @transform_7(%arg0: i32) -> (i32, i32, i32) {
    %c0_i32 = arith.constant 0 : i32
    %c0_i32_0 = arith.constant 0 : i32
    %c0_i32_1 = arith.constant 0 : i32
    return %arg0, %c0_i32, %c0_i32_0 : i32, i32, i32
  }
}

</mosaic_0001>

<bundles_post_ra>
// kernel: resnet_block.5
= control target key start
LH: loop header
LB: loop body
LE: loop exit
PB: predicated region body
PF: predicated region fallthrough
CT: control target
= control target key end

     0   :  { %v59_v0 = vmov 0   ;;  %s127_s2 = inlined_call_operand.vmem [shape: f32[8,1], index: 2, kind: input, shape index: {}]   ;;  %s128_s3 = inlined_call_operand.vmem [shape: f32[8,1], index: 3, kind: input, shape index: {}]   ;;  %s129_s0 = inlined_call_operand.vmem [shape: f32[2,8,256], index: 0, kind: input, shape index: {}, may-alias: {0,4}]   ;;  %s130_s1 = inlined_call_operand.vmem [shape: f32[2,8,256], index: 1, kind: input, shape index: {}]   ;;  %s131_s4 = inlined_call_operand.vmem [shape: f32[2,8,256], index: 4, kind: output, shape index: {}, may-alias: {0,4}]  }
   0x1   :  { %58 = vset.pattern.permute.xlu0 %v59_v0  ;;  %v21_v1 = vld [vmem:[%s127_s2] sm:$0xff]  ;;  %v18_v5 = vld [vmem:[%s129_s0 + $0x8] sm:$0xff]  ;;  %v19_v6 = vld [vmem:[%s129_s0 + $0x10] sm:$0xff] }
   0x2   :  { %24 = vperm.xlu0 %58, %v21_v1   ;;  %v31_v2 = vld [vmem:[%s128_s3] sm:$0xff]  ;;  %v20_v7 = vld [vmem:[%s129_s0 + $0x18] sm:$0xff]  ;;  %v42_v14 = vld [vmem:[%s130_s1 + $0x8] sm:$0xff] }
   0x3   :  { %v17_v3 = vld [vmem:[%s129_s0] sm:$0xff]  ;;  %v43_v15 = vld [vmem:[%s130_s1 + $0x10] sm:$0xff]  ;;  %v44_v16 = vld [vmem:[%s130_s1 + $0x18] sm:$0xff] }
   0x4   :  { %v41_v12 = vld [vmem:[%s130_s1] sm:$0xff] }
   0x6   :  { %34 = vperm.xlu0 %58, %v31_v2  }
  0x81   :  { %v25_v4 = vpop.permute.xlu0 %24 }
  0x82   :  { %v27_v8 = vmul.f32 %v25_v4, %v17_v3  ;;  %v28_v9 = vmul.f32 %v25_v4, %v18_v5  ;;  %v29_v10 = vmul.f32 %v25_v4, %v19_v6  ;;  %v30_v11 = vmul.f32 %v25_v4, %v20_v7 }
  0x85   :  { %v35_v13 = vpop.permute.xlu0 %34 }
  0x86   :  { %v37_v17 = vadd.f32 %v35_v13, %v27_v8  ;;  %v38_v18 = vadd.f32 %v35_v13, %v28_v9  ;;  %v39_v19 = vadd.f32 %v35_v13, %v29_v10  ;;  %v40_v20 = vadd.f32 %v35_v13, %v30_v11 }
  0x88   :  { %v45_v21 = vadd.f32 %v41_v12, %v37_v17  ;;  %v46_v22 = vadd.f32 %v42_v14, %v38_v18  ;;  %v47_v23 = vadd.f32 %v43_v15, %v39_v19  ;;  %v48_v24 = vadd.f32 %v44_v16, %v40_v20 }
  0x8a   :  { %49 = vst [vmem:[%s131_s4] sm:$0xff] %v45_v21  ;;  %50 = vst [vmem:[%s131_s4 + $0x8] sm:$0xff] %v46_v22 }
  0x8b   :  { %51 = vst [vmem:[%s131_s4 + $0x10] sm:$0xff] %v47_v23  ;;  %52 = vst [vmem:[%s131_s4 + $0x18] sm:$0xff] %v48_v24 }

// kernel: resnet_block.3
= control target key start
LH: loop header
LB: loop body
LE: loop exit
PB: predicated region body
PF: predicated region fallthrough
CT: control target
= control target key end

     0   :  { %s734_s18 = smov 0   ;;  %s844_s0 = inlined_call_operand.vmem [shape: f32[2,8,256], index: 0, kind: input, shape index: {}]   ;;  %s845_s1 = inlined_call_operand.vmem [shape: f32[8,72], index: 1, kind: input, shape index: {}]   ;;  %s846_s2 = inlined_call_operand.vmem [shape: f32[9,1,256], index: 2, kind: input, shape index: {}]   ;;  %s847_s3 = inlined_call_operand.vmem [shape: f32[2,8,256], index: 3, kind: output, shape index: {0}]   ;;  %s848_s4 = inlined_call_operand.vmem [shape: f32[2,8,1], index: 4, kind: output, shape index: {1}]   ;;  %s849_s5 = inlined_call_operand.vmem [shape: f32[2,8,1], index: 5, kind: output, shape index: {2}]  }
   0x1 LB: > { %s631_s19 = sadd.s32 4294967295, %s693_s18   ;;  %p635_p0 = scmp.ge.s32.totalorder %s693_s18, 1  ;;  %s693_s18 = sphi %s734_s18, %s16_s18  }
   0x2   : > { %p192_p1 = scmp.lt.s32.totalorder %s693_s18, 3 }
   0x4   : > { %p193_p2 = pnand %p635_p0, %p192_p1 }
   0x5   : > { %p228_p3 = scmp.lt.s32.totalorder (!%p193_p2), %s631_s19, 1  ;;  %s695_s24 = smov (!%p193_p2), 16   ;;  %v701_v2 = vmov (!%p193_p2), 0.0   ;;  %v252_v3 = vlaneseq (!%p193_p2)  ;;  %v642_v8 = vld [vmem:[%s846_s2 + $0x2] sm:$0x3] (!%p193_p2)  ;;  %vm426_vm8 = vcmask (!%p193_p2), 588800  }
   0x6   : > { %196 = sbr.rel (%p193_p2) target bundleno = 527 (0x20f), region = 32  ;;  %s696_s25 = smov (!%p193_p2), 17   ;;  %494 = vmatprep.mubr.f32.mxu0 (!%p193_p2), %v701_v2  ;;  %v257_v9 = vld [vmem:[%s846_s2] sm:$0x3] (!%p193_p2)  ;;  %v643_v26 = vld [vmem:[%s846_s2 + $0x4] sm:$0x3] (!%p193_p2) }
   0x7   : > { %s697_s26 = smov (!%p193_p2), 15   ;;  %s698_s27 = smov (!%p193_p2), 1   ;;  %v260_v4 = vshrl.u32 (!%p193_p2), %v252_v3, 7  ;;  %v770_v5 = vand.u32 (!%p193_p2), 127, %v252_v3  ;;  %v644_v27 = vld [vmem:[%s846_s2 + $0x6] sm:$0x3] (!%p193_p2) }
   0x8   : > { %s699_s28 = smov (!%p193_p2), 127   ;;  %s700_s29 = smov (!%p193_p2), 113   ;;  %v645_v36 = vld [vmem:[%s846_s2 + $0xa] sm:$0x3] (!%p193_p2)  ;;  %v646_v57 = vld [vmem:[%s846_s2 + $0xc] sm:$0x3] (!%p193_p2) }
   0x9   : > { %s702_s30 = smov (!%p193_p2), 112   ;;  %s703_s6 = smov (!%p193_p2), 111   ;;  %v772_v6 = vsub.s32 (!%p193_p2), 0, %v260_v4  ;;  %v774_v7 = vsub.s32 (!%p193_p2), 1, %v260_v4  ;;  %vm275_vm0 = vcmp.lt.s32.totalorder (!%p193_p2), %v770_v5, 16  ;;  %vm254_vm1 = vcmp.lt.s32.totalorder (!%p193_p2), %v770_v5, 17 }
   0xa   : > { %vm297_vm2 = vcmp.lt.s32.totalorder (!%p193_p2), %v770_v5, 15  ;;  %vm319_vm3 = vcmp.lt.s32.totalorder (!%p193_p2), %v770_v5, 1  ;;  %vm341_vm4 = vcmp.lt.s32.totalorder (!%p193_p2), %v770_v5, 127  ;;  %v647_v58 = vld [vmem:[%s846_s2 + $0xe] sm:$0x3] (!%p193_p2)  ;;  %vm363_vm5 = vcmp.lt.s32.totalorder (!%p193_p2), %v770_v5, 113 }
   0xb   : > { %v284_v12 = vrot.slane (!%p193_p2), %v642_v8, %v772_v6  ;;  %v262_v13 = vrot.slane (!%p193_p2), %v257_v9, %v772_v6  ;;  %v266_v14 = vrot.slane (!%p193_p2), %v257_v9, %v774_v7  ;;  %v288_v15 = vrot.slane (!%p193_p2), %v642_v8, %v774_v7  ;;  %v648_v8 = vld [vmem:[%s846_s2 + $0x10] sm:$0x3] (!%p193_p2) }
   0xc   : > { %v306_v32 = vrot.slane (!%p193_p2), %v643_v26, %v772_v6  ;;  %v310_v33 = vrot.slane (!%p193_p2), %v643_v26, %v774_v7  ;;  %v328_v34 = vrot.slane (!%p193_p2), %v644_v27, %v772_v6  ;;  %v332_v35 = vrot.slane (!%p193_p2), %v644_v27, %v774_v7 }
   0xd   : > { %s851_s19 = smov (!%p228_p3, %s631_s19), 1  ;;  %v350_v43 = vrot.slane %v645_v36, %v772_v6  ;;  %v354_v44 = vrot.slane %v645_v36, %v774_v7  ;;  %v372_v63 = vrot.slane %v646_v57, %v772_v6  ;;  %v376_v2 = vrot.slane %v646_v57, %v774_v7 }
   0xe   : > { %s652_s20 = sshll.u32 %s851_s19, 4  ;;  %vm385_vm6 = vcmp.lt.s32.totalorder %v770_v5, 112  ;;  %v394_v3 = vrot.slane %v647_v58, %v772_v6  ;;  %v398_v4 = vrot.slane %v647_v58, %v774_v7  ;;  %vm407_vm7 = vcmp.lt.s32.totalorder %v770_v5, 111  ;;  %v425_v5 = vld [vmem:[%s845_s1] sm:$0xff] }
   0xf   : > { %s232_s23 = scalar_lea.vmem %s844_s0, %s652_s20  ;;  %vm506_vm9 = vcmask 7168  }
  0x10   : > { %v750_v0 = vld [vmem:[%s232_s23] sm:$0xff]  ;;  %v754_v1 = vld [vmem:[%s232_s23 + $0x8] sm:$0xff] }
  0x11   : > { %271 = vrot.lane.b32.xlu1 %v750_v0, %s695_s24  ;;  %248 = vrot.lane.b32.xlu0 %v750_v0, %s696_s25 }
  0x15   : > { %273 = vrot.lane.b32.xlu1 %v754_v1, %s695_s24  ;;  %250 = vrot.lane.b32.xlu0 %v754_v1, %s696_s25 }
  0x19   : > { %295 = vrot.lane.b32.xlu1 %v754_v1, %s697_s26  ;;  %293 = vrot.lane.b32.xlu0 %v750_v0, %s697_s26 }
  0x1d   : > { %317 = vrot.lane.b32.xlu1 %v754_v1, %s698_s27  ;;  %315 = vrot.lane.b32.xlu0 %v750_v0, %s698_s27 }
  0x21   : > { %339 = vrot.lane.b32.xlu1 %v754_v1, %s699_s28  ;;  %337 = vrot.lane.b32.xlu0 %v750_v0, %s699_s28 }
  0x25   : > { %361 = vrot.lane.b32.xlu1 %v754_v1, %s700_s29  ;;  %359 = vrot.lane.b32.xlu0 %v750_v0, %s700_s29 }
  0x29   : > { %383 = vrot.lane.b32.xlu1 %v754_v1, %s702_s30  ;;  %381 = vrot.lane.b32.xlu0 %v750_v0, %s702_s30  ;;  %s237_s30 = scalar_lea.vmem %s847_s3, %s652_s20 }
  0x2d   : > { %405 = vrot.lane.b32.xlu1 %v754_v1, %s703_s6  ;;  %403 = vrot.lane.b32.xlu0 %v750_v0, %s703_s6  ;;  %s640_s6 = sshll.u32 %s851_s19, 3 }
  0x2e   : > { %s241_s9 = scalar_lea.vmem %s848_s4, %s640_s6  ;;  %s245_s20 = scalar_lea.vmem %s849_s5, %s640_s6 }
  0x83   : > { %v272_v10 = vpop.permute.xlu1 %271  ;;  %v249_v11 = vpop.permute.xlu0 %248 }
  0x87   : > { %v274_v16 = vpop.permute.xlu1 %273  ;;  %v251_v17 = vpop.permute.xlu0 %250 }
  0x88   : > { %v276_v18 = vsel %vm275_vm0, %v272_v10, %v274_v16  ;;  %v277_v19 = vsel %vm275_vm0, %v274_v16, %v272_v10  ;;  %v255_v20 = vsel %vm254_vm1, %v249_v11, %v251_v17  ;;  %v256_v21 = vsel %vm254_vm1, %v251_v17, %v249_v11 }
  0x89   : > { %v291_v22 = vmul.f32 %v284_v12, %v277_v19  ;;  %v269_v23 = vmul.f32 %v262_v13, %v256_v21  ;;  %v270_v24 = vmul.f32 %v266_v14, %v255_v20  ;;  %v292_v25 = vmul.f32 %v288_v15, %v276_v18 }
  0x8a   : > { %v420_v13 = vrot.slane %v648_v8, %v774_v7  ;;  %v416_v18 = vrot.slane %v648_v8, %v772_v6 }
  0x8b   : > { %v296_v28 = vpop.permute.xlu1 %295  ;;  %v294_v29 = vpop.permute.xlu0 %293  ;;  %v654_v30 = vpack.c.bf16 %v292_v25, %v270_v24  ;;  %v656_v31 = vpack.c.bf16 %v291_v22, %v269_v23 }
  0x8c   : > { %v298_v37 = vsel %vm297_vm2, %v294_v29, %v296_v28  ;;  %v299_v38 = vsel %vm297_vm2, %v296_v28, %v294_v29 }
  0x8d   : > { %655 = vmatprep.subr.bf16.mxu0 %v654_v30  ;;  %v313_v45 = vmul.f32 %v306_v32, %v299_v38  ;;  %v314_v46 = vmul.f32 %v310_v33, %v298_v37 }
  0x8e   : > { %657 = vmatpush1.bf16.msra.mxu0 %v656_v31 }
  0x8f   : > { %v318_v39 = vpop.permute.xlu1 %317  ;;  %v316_v40 = vpop.permute.xlu0 %315 }
  0x90   : > { %v320_v41 = vsel %vm319_vm3, %v316_v40, %v318_v39  ;;  %v321_v42 = vsel %vm319_vm3, %v318_v39, %v316_v40 }
  0x91   : > { %v335_v47 = vmul.f32 %v328_v34, %v321_v42  ;;  %v336_v48 = vmul.f32 %v332_v35, %v320_v41 }
  0x93   : > { %v340_v49 = vpop.permute.xlu1 %339  ;;  %v338_v50 = vpop.permute.xlu0 %337  ;;  %v658_v51 = vpack.c.bf16 %v336_v48, %v314_v46  ;;  %v660_v52 = vpack.c.bf16 %v335_v47, %v313_v45 }
  0x94   : > { %v342_v53 = vsel %vm341_vm4, %v338_v50, %v340_v49  ;;  %v343_v54 = vsel %vm341_vm4, %v340_v49, %v338_v50 }
  0x95   : > { %v357_v55 = vmul.f32 %v350_v43, %v342_v53  ;;  %v358_v56 = vmul.f32 %v354_v44, %v343_v54  ;;  %659 = vmatprep.subr.bf16.mxu0 %v658_v51 }
  0x96   : > { %661 = vmatpush1.bf16.msra.mxu0 %v660_v52 }
  0x97   : > { %v362_v59 = vpop.permute.xlu1 %361  ;;  %v360_v60 = vpop.permute.xlu0 %359  ;;  %v662_v61 = vpack.c.bf16 %v358_v56, %v754_v1  ;;  %v664_v62 = vpack.c.bf16 %v357_v55, %v750_v0 }
  0x98   : > { %v364_v9 = vsel %vm363_vm5, %v360_v60, %v362_v59  ;;  %v365_v10 = vsel %vm363_vm5, %v362_v59, %v360_v60 }
  0x99   : > { %663 = vmatprep.subr.bf16.mxu0 %v662_v61  ;;  %v379_v14 = vmul.f32 %v372_v63, %v364_v9  ;;  %v380_v15 = vmul.f32 %v376_v2, %v365_v10 }
  0x9a   : > { %665 = vmatpush1.bf16.msra.mxu0 %v664_v62 }
  0x9b   : > { %v384_v1 = vpop.permute.xlu1 %383  ;;  %v382_v0 = vpop.permute.xlu0 %381 }
  0x9c   : > { %v386_v11 = vsel %vm385_vm6, %v382_v0, %v384_v1  ;;  %v387_v12 = vsel %vm385_vm6, %v384_v1, %v382_v0 }
  0x9d   : > { %v401_v16 = vmul.f32 %v394_v3, %v386_v11  ;;  %v402_v17 = vmul.f32 %v398_v4, %v387_v12 }
  0x9f   : > { %v406_v19 = vpop.permute.xlu1 %405  ;;  %v666_v20 = vpack.c.bf16 %v402_v17, %v380_v15  ;;  %v404_v21 = vpop.permute.xlu0 %403  ;;  %v668_v22 = vpack.c.bf16 %v401_v16, %v379_v14 }
  0xa0   : > { %v408_v23 = vsel %vm407_vm7, %v404_v21, %v406_v19  ;;  %v409_v24 = vsel %vm407_vm7, %v406_v19, %v404_v21 }
  0xa1   : > { %667 = vmatprep.subr.bf16.mxu0 %v666_v20  ;;  %v424_v25 = vmul.f32 %v420_v13, %v409_v24  ;;  %v423_v26 = vmul.f32 %v416_v18, %v408_v23 }
  0xa2   : > { %669 = vmatpush1.bf16.msra.mxu0 %v668_v22 }
  0xa3   : > { %446 = vmatprep.subr.mxu0 %v424_v25 }
  0xa6   : > { %447 = vmatpush1.msra.mxu0 %v423_v26 }
  0xa7   : > { %649 = vmatmul.mubr.msk.f32.vlgmr.msra.gmra.mrb[0].mxu0 %vm426_vm8, %v425_v5 }
 0x17a   : > { %v496_v6 = vpop.f32.mrb[0].mxu0 }
 0x17b   : > { %v498_v7 = vpop.f32.mrb[1].mxu0  ;;  %501 = vst [vmem:[%s237_s30] sm:$0xff] %v496_v6  ;;  %v508_v27 = vmul.f32 %v496_v6, %v496_v6 }
 0x17c   : > { %502 = vst [vmem:[%s237_s30 + $0x8] sm:$0xff] %v498_v7  ;;  %v509_v28 = vmul.f32 %v498_v7, %v498_v7  ;;  %v503_v29 = vadd.f32 %v498_v7, %v496_v6 }
 0x17e   : > { %504 = vadd.xlane.f32.xlu0 %v503_v29  ;;  %v510_v30 = vadd.f32 %v509_v28, %v508_v27 }
 0x180   : > { %511 = vadd.xlane.f32.xlu1 %v510_v30 }
 0x20b   : > { %v505_v31 = vpop.xlane.xlu0 %504 }
 0x20c   : > { %507 = vst.msk [vmem:[%s241_s9] sm:$0xff] %vm506_vm9, %v505_v31 }
 0x20d   : > { %v512_v32 = vpop.xlane.xlu1 %511 }
 0x20e   : > { %513 = vst.msk [vmem:[%s245_s20] sm:$0xff] %vm506_vm9, %v512_v32 }
 0x20f PF: > { %s16_s18 = sadd.s32 1, %s693_s18  }
 0x210   : > { %p13_p4 = scmp.ge.s32.totalorder %s16_s18, 4  }
 0x212   :  { %15 = sbr.rel (!%p13_p4) target bundleno = 1 (0x1), region = 93 }

// kernel: resnet_block.4
= control target key start
LH: loop header
LB: loop body
LE: loop exit
PB: predicated region body
PF: predicated region fallthrough
CT: control target
= control target key end

     0   :  { %s819_s24 = smov 0   ;;  %s935_s0 = inlined_call_operand.vmem [shape: f32[2,8,256], index: 0, kind: input, shape index: {}]   ;;  %s936_s1 = inlined_call_operand.vmem [shape: f32[8,1], index: 1, kind: input, shape index: {}]   ;;  %s937_s2 = inlined_call_operand.vmem [shape: f32[8,1], index: 2, kind: input, shape index: {}]   ;;  %s938_s3 = inlined_call_operand.vmem [shape: f32[8,72], index: 3, kind: input, shape index: {}]   ;;  %s939_s4 = inlined_call_operand.vmem [shape: f32[9,1,256], index: 4, kind: input, shape index: {}]   ;;  %s940_s5 = inlined_call_operand.vmem [shape: f32[2,8,256], index: 5, kind: output, shape index: {0}]   ;;  %s941_s6 = inlined_call_operand.vmem [shape: f32[2,8,1], index: 6, kind: output, shape index: {1}]   ;;  %s942_s7 = inlined_call_operand.vmem [shape: f32[2,8,1], index: 7, kind: output, shape index: {2}]  }
   0x1 LB: > { %s703_s25 = sadd.s32 4294967295, %s767_s24   ;;  %p707_p0 = scmp.ge.s32.totalorder %s767_s24, 1  ;;  %s767_s24 = sphi %s819_s24, %s18_s24  }
   0x2   : > { %p242_p1 = scmp.lt.s32.totalorder %s767_s24, 3 }
   0x4   : > { %p243_p2 = pnand %p707_p0, %p242_p1 }
   0x5   : > { %v302_v0 = vld [vmem:[%s936_s1] sm:$0xff] (!%p243_p2)  ;;  %v769_v1 = vmov (!%p243_p2), 0   ;;  %p282_p3 = scmp.lt.s32.totalorder (!%p243_p2), %s703_s25, 1  ;;  %s770_s11 = smov (!%p243_p2), 16   ;;  %v778_v13 = vmov (!%p243_p2), 0.0   ;;  %v324_v14 = vlaneseq (!%p243_p2)  ;;  %vm498_vm8 = vcmask (!%p243_p2), 588800  }
   0x6   : > { %246 = sbr.rel (%p243_p2) target bundleno = 657 (0x291), region = 40  ;;  %760 = vset.pattern.permute.xlu0 (!%p243_p2), %v769_v1  ;;  %v310_v2 = vld [vmem:[%s937_s2] sm:$0xff] (!%p243_p2)  ;;  %s771_s12 = smov (!%p243_p2), 17   ;;  %566 = vmatprep.mubr.f32.mxu0 (!%p243_p2), %v778_v13  ;;  %v717_v49 = vld [vmem:[%s939_s4 + $0xa] sm:$0x3] (!%p243_p2)  ;;  %vm578_vm9 = vcmask (!%p243_p2), 7168  }
   0x7   : > { %305 = vperm.xlu0 (!%p243_p2), %760, %v302_v0   ;;  %s772_s13 = smov (!%p243_p2), 15   ;;  %s773_s14 = smov (!%p243_p2), 1   ;;  %v332_v15 = vshrl.u32 (!%p243_p2), %v324_v14, 7  ;;  %v861_v18 = vand.u32 (!%p243_p2), 127, %v324_v14  ;;  %v329_v20 = vld [vmem:[%s939_s4] sm:$0x3] (!%p243_p2) }
   0x8   : > { %s774_s15 = smov (!%p243_p2), 127   ;;  %s775_s16 = smov (!%p243_p2), 113   ;;  %v714_v22 = vld [vmem:[%s939_s4 + $0x2] sm:$0x3] (!%p243_p2)  ;;  %v715_v37 = vld [vmem:[%s939_s4 + $0x4] sm:$0x3] (!%p243_p2) }
   0x9   : > { %s776_s17 = smov (!%p243_p2), 112   ;;  %s777_s18 = smov (!%p243_p2), 111   ;;  %v863_v19 = vsub.s32 (!%p243_p2), 0, %v332_v15  ;;  %v868_v21 = vsub.s32 (!%p243_p2), 1, %v332_v15  ;;  %vm326_vm0 = vcmp.lt.s32.totalorder (!%p243_p2), %v861_v18, 17  ;;  %vm347_vm1 = vcmp.lt.s32.totalorder (!%p243_p2), %v861_v18, 16 }
   0xa   : > { %v716_v40 = vld [vmem:[%s939_s4 + $0x6] sm:$0x3] (!%p243_p2)  ;;  %vm369_vm2 = vcmp.lt.s32.totalorder (!%p243_p2), %v861_v18, 15  ;;  %vm391_vm3 = vcmp.lt.s32.totalorder (!%p243_p2), %v861_v18, 1  ;;  %vm413_vm4 = vcmp.lt.s32.totalorder (!%p243_p2), %v861_v18, 127  ;;  %vm435_vm5 = vcmp.lt.s32.totalorder (!%p243_p2), %v861_v18, 113 }
   0xb   : > { %313 = vperm.xlu0 (!%p243_p2), %760, %v310_v2   ;;  %v334_v25 = vrot.slane (!%p243_p2), %v329_v20, %v863_v19  ;;  %v356_v26 = vrot.slane (!%p243_p2), %v714_v22, %v863_v19  ;;  %v338_v27 = vrot.slane (!%p243_p2), %v329_v20, %v868_v21  ;;  %v360_v28 = vrot.slane (!%p243_p2), %v714_v22, %v868_v21 }
   0xc   : > { %v378_v44 = vrot.slane (!%p243_p2), %v715_v37, %v863_v19  ;;  %v382_v46 = vrot.slane (!%p243_p2), %v715_v37, %v868_v21  ;;  %v400_v47 = vrot.slane (!%p243_p2), %v716_v40, %v863_v19  ;;  %v404_v48 = vrot.slane (!%p243_p2), %v716_v40, %v868_v21 }
   0xd   : > { %s944_s25 = smov (!%p282_p3, %s703_s25), 1  ;;  %v422_v55 = vrot.slane %v717_v49, %v863_v19  ;;  %v426_v56 = vrot.slane %v717_v49, %v868_v21  ;;  %vm457_vm6 = vcmp.lt.s32.totalorder %v861_v18, 112  ;;  %vm479_vm7 = vcmp.lt.s32.totalorder %v861_v18, 111 }
   0xe   : > { %s724_s30 = sshll.u32 %s944_s25, 4  ;;  %s712_s20 = sshll.u32 %s944_s25, 3 }
   0xf   : > { %s286_s10 = scalar_lea.vmem %s935_s0, %s724_s30  ;;  %s291_s19 = scalar_lea.vmem %s940_s5, %s724_s30 }
  0x10   : > { %v300_v4 = vld [vmem:[%s286_s10] sm:$0xff]  ;;  %v301_v5 = vld [vmem:[%s286_s10 + $0x8] sm:$0xff]  ;;  %s295_s23 = scalar_lea.vmem %s941_s6, %s712_s20  ;;  %s299_s30 = scalar_lea.vmem %s942_s7, %s712_s20 }
  0x86   : > { %v306_v3 = vpop.permute.xlu0 %305 }
  0x87   : > { %v308_v6 = vmul.f32 %v306_v3, %v300_v4  ;;  %v309_v8 = vmul.f32 %v306_v3, %v301_v5  ;;  %v718_v5 = vld [vmem:[%s939_s4 + $0xc] sm:$0x3] }
  0x88   : > { %v448_v14 = vrot.slane %v718_v5, %v868_v21 }
  0x8a   : > { %v314_v7 = vpop.permute.xlu0 %313 }
  0x8b   : > { %v316_v9 = vadd.f32 %v314_v7, %v308_v6  ;;  %v317_v10 = vadd.f32 %v314_v7, %v309_v8  ;;  %v719_v6 = vld [vmem:[%s939_s4 + $0xe] sm:$0x3] }
  0x8c   : > { %v466_v15 = vrot.slane %v719_v6, %v863_v19 }
  0x8d   : > { %v841_v11 = vmax.f32 %v316_v9, 0.0  ;;  %v845_v12 = vmax.f32 %v317_v10, 0.0  ;;  %v444_v10 = vrot.slane %v718_v5, %v863_v19 }
  0x8f   : > { %343 = vrot.lane.b32.xlu0 %v841_v11, %s770_s11  ;;  %320 = vrot.lane.b32.xlu1 %v841_v11, %s771_s12 }
  0x93   : > { %365 = vrot.lane.b32.xlu0 %v841_v11, %s772_s13  ;;  %322 = vrot.lane.b32.xlu1 %v845_v12, %s771_s12 }
  0x97   : > { %387 = vrot.lane.b32.xlu0 %v841_v11, %s773_s14  ;;  %345 = vrot.lane.b32.xlu1 %v845_v12, %s770_s11 }
  0x9b   : > { %409 = vrot.lane.b32.xlu0 %v841_v11, %s774_s15  ;;  %367 = vrot.lane.b32.xlu1 %v845_v12, %s772_s13 }
  0x9f   : > { %431 = vrot.lane.b32.xlu0 %v841_v11, %s775_s16  ;;  %389 = vrot.lane.b32.xlu1 %v845_v12, %s773_s14 }
  0xa3   : > { %453 = vrot.lane.b32.xlu0 %v841_v11, %s776_s17  ;;  %411 = vrot.lane.b32.xlu1 %v845_v12, %s774_s15 }
  0xa7   : > { %475 = vrot.lane.b32.xlu0 %v841_v11, %s777_s18  ;;  %433 = vrot.lane.b32.xlu1 %v845_v12, %s775_s16 }
  0xab   : > { %455 = vrot.lane.b32.xlu1 %v845_v12, %s776_s17 }
  0xaf   : > { %477 = vrot.lane.b32.xlu1 %v845_v12, %s777_s18 }
 0x101   : > { %v344_v16 = vpop.permute.xlu0 %343  ;;  %v321_v17 = vpop.permute.xlu1 %320 }
 0x105   : > { %v366_v23 = vpop.permute.xlu0 %365  ;;  %v323_v24 = vpop.permute.xlu1 %322 }
 0x106   : > { %v327_v29 = vsel %vm326_vm0, %v321_v17, %v323_v24  ;;  %v328_v30 = vsel %vm326_vm0, %v323_v24, %v321_v17  ;;  %v720_v17 = vld [vmem:[%s939_s4 + $0x10] sm:$0x3] }
 0x107   : > { %v341_v35 = vmul.f32 %v334_v25, %v328_v30  ;;  %v342_v38 = vmul.f32 %v338_v27, %v327_v29  ;;  %v492_v24 = vrot.slane %v720_v17, %v868_v21 }
 0x109   : > { %v388_v31 = vpop.permute.xlu0 %387  ;;  %v346_v32 = vpop.permute.xlu1 %345 }
 0x10a   : > { %v348_v33 = vsel %vm347_vm1, %v344_v16, %v346_v32  ;;  %v349_v34 = vsel %vm347_vm1, %v346_v32, %v344_v16  ;;  %v470_v16 = vrot.slane %v719_v6, %v868_v21  ;;  %v497_v21 = vld [vmem:[%s938_s3] sm:$0xff] }
 0x10b   : > { %v363_v36 = vmul.f32 %v356_v26, %v349_v34  ;;  %v364_v39 = vmul.f32 %v360_v28, %v348_v33  ;;  %v488_v33 = vrot.slane %v720_v17, %v863_v19 }
 0x10d   : > { %v368_v41 = vpop.permute.xlu1 %367  ;;  %v726_v42 = vpack.c.bf16 %v364_v39, %v342_v38  ;;  %v728_v43 = vpack.c.bf16 %v363_v36, %v341_v35  ;;  %v410_v45 = vpop.permute.xlu0 %409 }
 0x10e   : > { %v370_v50 = vsel %vm369_vm2, %v366_v23, %v368_v41  ;;  %v371_v51 = vsel %vm369_vm2, %v368_v41, %v366_v23 }
 0x10f   : > { %727 = vmatprep.subr.bf16.mxu0 %v726_v42  ;;  %v385_v57 = vmul.f32 %v378_v44, %v371_v51  ;;  %v386_v58 = vmul.f32 %v382_v46, %v370_v50 }
 0x110   : > { %729 = vmatpush1.bf16.msra.mxu0 %v728_v43 }
 0x111   : > { %v390_v52 = vpop.permute.xlu1 %389  ;;  %v432_v61 = vpop.permute.xlu0 %431 }
 0x112   : > { %v392_v53 = vsel %vm391_vm3, %v388_v31, %v390_v52  ;;  %v393_v54 = vsel %vm391_vm3, %v390_v52, %v388_v31 }
 0x113   : > { %v407_v59 = vmul.f32 %v400_v47, %v393_v54  ;;  %v408_v60 = vmul.f32 %v404_v48, %v392_v53 }
 0x115   : > { %v412_v62 = vpop.permute.xlu1 %411  ;;  %v730_v63 = vpack.c.bf16 %v408_v60, %v386_v58  ;;  %v732_v0 = vpack.c.bf16 %v407_v59, %v385_v57  ;;  %v454_v13 = vpop.permute.xlu0 %453 }
 0x116   : > { %v414_v1 = vsel %vm413_vm4, %v410_v45, %v412_v62  ;;  %v415_v2 = vsel %vm413_vm4, %v412_v62, %v410_v45 }
 0x117   : > { %v429_v3 = vmul.f32 %v422_v55, %v414_v1  ;;  %v430_v4 = vmul.f32 %v426_v56, %v415_v2  ;;  %731 = vmatprep.subr.bf16.mxu0 %v730_v63 }
 0x118   : > { %733 = vmatpush1.bf16.msra.mxu0 %v732_v0 }
 0x119   : > { %v434_v7 = vpop.permute.xlu1 %433  ;;  %v734_v8 = vpack.c.bf16 %v430_v4, %v845_v12  ;;  %v736_v9 = vpack.c.bf16 %v429_v3, %v841_v11  ;;  %v476_v29 = vpop.permute.xlu0 %475 }
 0x11a   : > { %v436_v20 = vsel %vm435_vm5, %v432_v61, %v434_v7  ;;  %v437_v12 = vsel %vm435_vm5, %v434_v7, %v432_v61 }
 0x11b   : > { %735 = vmatprep.subr.bf16.mxu0 %v734_v8  ;;  %v451_v25 = vmul.f32 %v444_v10, %v436_v20  ;;  %v452_v26 = vmul.f32 %v448_v14, %v437_v12 }
 0x11c   : > { %737 = vmatpush1.bf16.msra.mxu0 %v736_v9 }
 0x11d   : > { %v456_v11 = vpop.permute.xlu1 %455 }
 0x11e   : > { %v458_v22 = vsel %vm457_vm6, %v454_v13, %v456_v11  ;;  %v459_v23 = vsel %vm457_vm6, %v456_v11, %v454_v13 }
 0x11f   : > { %v473_v27 = vmul.f32 %v466_v15, %v458_v22  ;;  %v474_v28 = vmul.f32 %v470_v16, %v459_v23 }
 0x121   : > { %v478_v30 = vpop.permute.xlu1 %477  ;;  %v738_v31 = vpack.c.bf16 %v474_v28, %v452_v26  ;;  %v740_v32 = vpack.c.bf16 %v473_v27, %v451_v25 }
 0x122   : > { %v481_v34 = vsel %vm479_vm7, %v478_v30, %v476_v29  ;;  %v480_v35 = vsel %vm479_vm7, %v476_v29, %v478_v30 }
 0x123   : > { %v496_v36 = vmul.f32 %v492_v24, %v481_v34  ;;  %739 = vmatprep.subr.bf16.mxu0 %v738_v31  ;;  %v495_v18 = vmul.f32 %v488_v33, %v480_v35 }
 0x124   : > { %741 = vmatpush1.bf16.msra.mxu0 %v740_v32 }
 0x125   : > { %518 = vmatprep.subr.mxu0 %v496_v36 }
 0x128   : > { %519 = vmatpush1.msra.mxu0 %v495_v18 }
 0x129   : > { %721 = vmatmul.mubr.msk.f32.vlgmr.msra.gmra.mrb[0].mxu0 %vm498_vm8, %v497_v21 }
 0x1fc   : > { %v568_v19 = vpop.f32.mrb[0].mxu0 }
 0x1fd   : > { %v570_v37 = vpop.f32.mrb[1].mxu0  ;;  %573 = vst [vmem:[%s291_s19] sm:$0xff] %v568_v19  ;;  %v580_v38 = vmul.f32 %v568_v19, %v568_v19 }
 0x1fe   : > { %574 = vst [vmem:[%s291_s19 + $0x8] sm:$0xff] %v570_v37  ;;  %v581_v39 = vmul.f32 %v570_v37, %v570_v37  ;;  %v575_v40 = vadd.f32 %v570_v37, %v568_v19 }
 0x200   : > { %576 = vadd.xlane.f32.xlu0 %v575_v40  ;;  %v582_v41 = vadd.f32 %v581_v39, %v580_v38 }
 0x202   : > { %583 = vadd.xlane.f32.xlu1 %v582_v41 }
 0x28d   : > { %v577_v42 = vpop.xlane.xlu0 %576 }
 0x28e   : > { %579 = vst.msk [vmem:[%s295_s23] sm:$0xff] %vm578_vm9, %v577_v42 }
 0x28f   : > { %v584_v43 = vpop.xlane.xlu1 %583 }
 0x290   : > { %585 = vst.msk [vmem:[%s299_s30] sm:$0xff] %vm578_vm9, %v584_v43 }
 0x291 PF: > { %s18_s24 = sadd.s32 1, %s767_s24  }
 0x292   : > { %p15_p4 = scmp.ge.s32.totalorder %s18_s24, 4  }
 0x294   :  { %17 = sbr.rel (!%p15_p4) target bundleno = 1 (0x1), region = 101 }

</bundles_post_ra>
